<compile_context>
chip_gen: v7x
topology: tpu7x:2x2x1
jax: 0.10.0
libtpu: 0.0.40
codegen_flags: <defaults>
</compile_context>

<pallas_src>
import jax
import jax.numpy as jnp
from jax.experimental import pallas as pl
from jax.experimental.pallas import tpu as pltpu

_VMEM = pltpu.MemorySpace.VMEM


def _cat_linear_kernel(x_ref, w_ref, b_ref, o_ref):
    # x_ref : (B, F)     input tile
    # w_ref : (F, OUT)   pre-folded, pre-transposed weight  (W[:, :F] + W[:, F:]).T
    # b_ref : (1, OUT)   bias
    # o_ref : (B, OUT)   output tile
    y = jnp.dot(x_ref[...], w_ref[...], preferred_element_type=jnp.float32)
    o_ref[...] = (y + b_ref[...]).astype(o_ref.dtype)


def _round_up(v, m):
    return ((v + m - 1) // m) * m


def cat_linear(x, w, b, *, single_tile_rows=32768, batch_tile=32768):
    """Forward of Model: cat((x, x), dim=1) @ w.T + b, as a Pallas TPU kernel.

    x : (B, F)      input
    w : (OUT, 2F)   torch.nn.Linear.weight layout
    b : (OUT,)      torch.nn.Linear.bias
    """
    B, F = x.shape
    OUT, IN = w.shape
    assert IN == 2 * F, "weight in_features must equal 2 * x features (cat doubles it)"
    assert batch_tile % 8 == 0, "batch tile must be a multiple of the f32 sublane (8)"

    itemsize = jnp.dtype(x.dtype).itemsize

    # Fold the duplicated-input halves of the weight and pre-transpose — done
    # once at trace time, outside the kernel.
    w_eff = (w[:, :F] + w[:, F:]).T.astype(x.dtype)        # (F, OUT)
    b2d = b.reshape(1, OUT).astype(jnp.float32)            # (1, OUT)

    cost = pl.CostEstimate(
        flops=2 * B * F * OUT,
        transcendentals=0,
        bytes_accessed=(B * F + F * OUT + B * OUT + OUT) * itemsize,
    )

    if B <= single_tile_rows:
        # Resident path: whole problem lives in VMEM, single invocation,
        # no grid / pipeline / double-buffer machinery.
        resident_bytes = (B * (F + OUT)) * itemsize + (F * OUT + OUT) * 4
        cp = None
        if resident_bytes > (12 << 20):
            cp = pltpu.CompilerParams(
                vmem_limit_bytes=min(int(2 * resident_bytes) + (1 << 20), 48 << 20)
            )
        kwargs = {"compiler_params": cp} if cp is not None else {}
        return pl.pallas_call(
            _cat_linear_kernel,
            out_shape=jax.ShapeDtypeStruct((B, OUT), x.dtype),
            in_specs=[
                pl.BlockSpec(memory_space=_VMEM),
                pl.BlockSpec(memory_space=_VMEM),
                pl.BlockSpec(memory_space=_VMEM),
            ],
            out_specs=pl.BlockSpec(memory_space=_VMEM),
            cost_estimate=cost,
            **kwargs,
        )(x, w_eff, b2d)

    # Tiled path: batch axis tiled; weight/bias broadcast across the grid.
    # Keep grid length >= 2 so "parallel" can shard across v7x's two TCs.
    tb = min(batch_tile, _round_up(pl.cdiv(B, 2), 8))
    grid = (pl.cdiv(B, tb),)

    # Double-buffered input/output tiles + broadcast weight/bias.
    tiled_bytes = 2 * tb * (F + OUT) * itemsize + 2 * (F * OUT + OUT) * 4
    cp_kwargs = {"dimension_semantics": ("parallel",)}
    if tiled_bytes > (12 << 20):
        cp_kwargs["vmem_limit_bytes"] = min(int(2 * tiled_bytes) + (1 << 20), 48 << 20)

    return pl.pallas_call(
        _cat_linear_kernel,
        out_shape=jax.ShapeDtypeStruct((B, OUT), x.dtype),   # no padding, no slicing
        grid=grid,
        in_specs=[
            pl.BlockSpec((tb, F), lambda i: (i, 0)),
            pl.BlockSpec((F, OUT), lambda i: (0, 0)),
            pl.BlockSpec((1, OUT), lambda i: (0, 0)),
        ],
        out_specs=pl.BlockSpec((tb, OUT), lambda i: (i, 0)),
        compiler_params=pltpu.CompilerParams(**cp_kwargs),
        cost_estimate=cost,
    )(x, w_eff, b2d)


if __name__ == "__main__":
    key = jax.random.PRNGKey(0)
    k_x, k_w, k_b, k_x2, k_x3 = jax.random.split(key, 5)

    OUT, IN = 20, 20
    F = IN // 2           # cat((x, x), 1) doubles features -> Linear(20, 20) input
    B = 8

    # Deterministic parameter init mimicking torch.nn.Linear default:
    # U(-1/sqrt(in_features), 1/sqrt(in_features))
    bound = 1.0 / jnp.sqrt(jnp.float32(IN))
    w = jax.random.uniform(k_w, (OUT, IN), jnp.float32, -bound, bound)
    b = jax.random.uniform(k_b, (OUT,), jnp.float32, -bound, bound)

    # --- small batch: resident (no-grid) path ---
    x = jax.random.normal(k_x, (B, F), jnp.float32)
    out = jax.block_until_ready(cat_linear(x, w, b))
    ref = jnp.concatenate([x, x], axis=1) @ w.T + b
    assert out.shape == (B, OUT)
    assert jnp.allclose(out, ref, atol=1e-4, rtol=1e-4)

    # --- tiled path, evenly divisible, grid >= 2 ---
    B2 = 1024
    x2 = jax.random.normal(k_x2, (B2, F), jnp.float32)
    out2 = jax.block_until_ready(
        cat_linear(x2, w, b, single_tile_rows=256, batch_tile=512)
    )
    ref2 = jnp.concatenate([x2, x2], axis=1) @ w.T + b
    assert out2.shape == (B2, OUT)
    assert jnp.allclose(out2, ref2, atol=1e-4, rtol=1e-4)

    # --- tiled path, ragged last block (no pad / no output slice) ---
    B3 = 1000
    x3 = jax.random.normal(k_x3, (B3, F), jnp.float32)
    out3 = jax.block_until_ready(
        cat_linear(x3, w, b, single_tile_rows=256, batch_tile=384)
    )
    ref3 = jnp.concatenate([x3, x3], axis=1) @ w.T + b
    assert out3.shape == (B3, OUT)
    assert jnp.allclose(out3, ref3, atol=1e-4, rtol=1e-4)

    print("KERNEL_OK")
</pallas_src>

<mosaic_0001>
module attributes {stable_mosaic.version = 11 : i64} {
  func.func @_cat_linear_kernel(%arg0: memref<8x10xf32, #tpu.memory_space<vmem>>, %arg1: memref<10x20xf32, #tpu.memory_space<vmem>>, %arg2: memref<1x20xf32, #tpu.memory_space<vmem>>, %arg3: memref<8x20xf32, #tpu.memory_space<vmem>>) attributes {dimension_semantics = [], scalar_prefetch = 0 : i64, scratch_operands = 0 : i64, tpu.core_type = #tpu.core_type<tc>} {
    %c0 = arith.constant 0 : index
    %c0_0 = arith.constant 0 : index
    %0 = vector.load %arg0[%c0, %c0_0] : memref<8x10xf32, #tpu.memory_space<vmem>>, vector<8x10xf32>
    %c0_1 = arith.constant 0 : index
    %c0_2 = arith.constant 0 : index
    %1 = vector.load %arg1[%c0_1, %c0_2] : memref<10x20xf32, #tpu.memory_space<vmem>>, vector<10x20xf32>
    %cst = arith.constant dense<0.000000e+00> : vector<8x20xf32>
    %2 = tpu.matmul %0, %1, %cst {dimension_numbers = #tpu.dot_dimension_numbers<[1], [0], [0], [1], [0, 0, 1, 1], [], []>} : vector<8x10xf32>, vector<10x20xf32>, vector<8x20xf32> -> vector<8x20xf32>
    %c0_3 = arith.constant 0 : index
    %c0_4 = arith.constant 0 : index
    %3 = vector.load %arg2[%c0_3, %c0_4] : memref<1x20xf32, #tpu.memory_space<vmem>>, vector<1x20xf32>
    %4 = vector.broadcast %3 : vector<1x20xf32> to vector<8x20xf32>
    %5 = arith.addf %2, %4 : vector<8x20xf32>
    %c0_5 = arith.constant 0 : index
    %c0_6 = arith.constant 0 : index
    %6 = vector.load %arg3[%c0_5, %c0_6] : memref<8x20xf32, #tpu.memory_space<vmem>>, vector<8x20xf32>
    tpu.vector_store %arg3[%c0_5, %c0_6], %5 {strides = array<i32>} : memref<8x20xf32, #tpu.memory_space<vmem>>, vector<8x20xf32>,
    return
  }
}

</mosaic_0001>

<bundles_post_ra>
// kernel: tpu_custom_call.1
= control target key start
LH: loop header
LB: loop body
LE: loop exit
PB: predicated region body
PF: predicated region fallthrough
CT: control target
= control target key end

     0   :  { %8 = vsyncpa [#allocation3], 0  ;;  %s320_s0 = inlined_call_operand.hbm [shape: f32[8,10], index: 0, kind: input, shape index: {}]   ;;  %s321_s1 = inlined_call_operand.hbm [shape: f32[10,20], index: 1, kind: input, shape index: {}]   ;;  %s322_s2 = inlined_call_operand.vmem [shape: f32[1,20], index: 2, kind: input, shape index: {}]   ;;  %s323_s3 = inlined_call_operand.hbm [shape: f32[8,20], index: 3, kind: output, shape index: {}]  }
   0x1   :  { %9 = vsyncpa [#allocation6], 0 }
   0x2   :  { %10 = vsyncpa [#allocation4], 0  ;;  %s245_s12 = smov [#allocation2]   ;;  %s246_s14 = smov [#allocation5]  }
   0x3   :  { %s17_s13 = sshll.u32 %s245_s12, 4  ;;  %s26_s15 = sshll.u32 %s246_s14, 4  ;;  %s18_s13 = int_to_ptr.vmem [resolvable:$true] %s17_s13  ;;  %s274_s15 = int_to_ptr.vmem [resolvable:$true] %s26_s15 }
   0x4   :  { %s173_s18 = scalar_lea.hbm %s320_s0, 128 }
   0x5   :  { %p174_p0 = scmp.ne.s32.totalorder %s320_s0, %s173_s18  ;;  %p177_p1 = scmp.lt.u32.totalorder %s173_s18, %s320_s0 }
   0x7   :  { %p179_p2 = pnand %p177_p1, %p174_p0 }
   0x9   :  { %182 = shalt.err (!%p179_p2)
}
   0xa   :  { %s183_s23 = scalar_lea.vmem %s18_s13, 128  ;;  %p188_p4 = scmp.lt.s32.totalorder %s18_s13, %s18_s13 }
   0xb   :  { %p184_p3 = scmp.ne.s32.totalorder %s18_s13, %s183_s23  ;;  %p189_p5 = scmp.lt.s32.totalorder %s183_s23, %s183_s23 }
   0xd   :  { %p190_p6 = por %p189_p5, %p188_p4 }
   0xf   :  { %p191_p7 = pnand %p190_p6, %p184_p3 }
  0x11   :  { %194 = shalt.err (!%p191_p7)
}
  0x12   :  { %20 = dma.hbm_to_vmem [thread:$0]  %s320_s0, 128, %s18_s13, [#allocation3]  }
  0x13   :  { %s195_s28 = scalar_lea.hbm %s321_s1, 256 }
  0x14   :  { %p196_p8 = scmp.ne.s32.totalorder %s321_s1, %s195_s28  ;;  %p199_p9 = scmp.lt.u32.totalorder %s195_s28, %s321_s1 }
  0x16   :  { %p201_p10 = pnand %p199_p9, %p196_p8 }
  0x18   :  { %204 = shalt.err (!%p201_p10)
}
  0x19   :  { %s205_s6 = scalar_lea.vmem %s274_s15, 256  ;;  %p210_p12 = scmp.lt.s32.totalorder %s274_s15, %s274_s15 }
  0x1a   :  { %p206_p11 = scmp.ne.s32.totalorder %s274_s15, %s205_s6  ;;  %p211_p13 = scmp.lt.s32.totalorder %s205_s6, %s205_s6 }
  0x1c   :  { %p212_p0 = por %p211_p13, %p210_p12 }
  0x1e   :  { %p213_p1 = pnand %p212_p0, %p206_p11 }
  0x20   :  { %216 = shalt.err (!%p213_p1)
}
  0x21   :  { %s247_s0 = smov 128   ;;  %s248_s7 = smov 8  }
  0x22   :  { %32 = dma.hbm_to_vmem [thread:$0]  %s321_s1, 256, %s274_s15, [#allocation6], %s247_s0, %s247_s0, %s248_s7  }
  0x23   :  { %239 = dma.done.wait [#allocation3], 128  }
  0x24   :  { %240 = vsyncadd [#allocation3], 4294967168 }
  0x25   :  { %241 = dma.done.wait [#allocation6], 256  }
  0x26   :  { %242 = vsyncadd [#allocation6], 4294967040  ;;  %v249_v0 = vmov 0.0|0.0   ;;  %vm250_vm0 = vmmov 0   ;;  %v251_v1 = vmov 0.0   ;;  %vm55_vm1 = vcmask 1041408  }
  0x27   :  { %160 = vmatprep.subr.bf16.mxu0 %v249_v0  ;;  %157 = vmatprep.mubr.msk.f32.mxu0 %vm250_vm0, %v251_v1  ;;  %v42_v2 = vld [vmem:[#allocation5] sm:$0xff]  ;;  %v43_v3 = vld [vmem:[#allocation5 + $0x8] sm:$0x3]  ;;  %vm252_vm2 = vmmov 1   ;;  %v41_v5 = vld [vmem:[#allocation2] sm:$0xff]  ;;  %vm51_vm4 = vcmask 80896  }
  0x28   :  { %vm162_vm3 = vmpackc.low %vm55_vm1, %vm252_vm2  ;;  %v161_v4 = vpack.c.bf16 %v43_v3, %v42_v2  ;;  %v147_v6 = vld [vmem:[%s322_s2] ss:$0 sm:$0xff]  ;;  %s253_s11 = smov [#allocation7]   ;;  %vm129_vm5 = vcmask 162816  }
  0x29   :  { %s137_s12 = sshll.u32 %s253_s11, 4  ;;  %s138_s12 = int_to_ptr.vmem [resolvable:$true] %s137_s12 }
  0x2a   :  { %163 = vmatpush3.bf16.msk.msra.mxu0 %vm162_vm3, %v161_v4  ;;  %s217_s13 = scalar_lea.vmem %s138_s12, 128  ;;  %p222_p3 = scmp.lt.s32.totalorder %s138_s12, %s138_s12 }
  0x2b   :  { %p218_p2 = scmp.ne.s32.totalorder %s138_s12, %s217_s13  ;;  %p223_p4 = scmp.lt.s32.totalorder %s217_s13, %s217_s13 }
  0x2d   :  { %158 = vmatmul.mubr.msk.f32.vlgmr.msra.gmra.mrb[0].mxu0 %vm51_vm4, %v41_v5  ;;  %p224_p5 = por %p223_p4, %p222_p3 }
  0x2f   :  { %p225_p6 = pnand %p224_p5, %p218_p2 }
 0x100   :  { %v125_v7 = vpop.f32.mrb[0].mxu0 }
 0x101   :  { %v126_v8 = vadd.f32 %v147_v6, %v125_v7  ;;  %v159_v9 = vpop.f32.mrb[1].mxu0 }
 0x103   :  { %130 = vst.msk [vmem:[#allocation7] sm:$0xff] %vm129_vm5, %v126_v8 }
 0x104   :  { %228 = shalt.err (!%p225_p6)
}
 0x105   :  { %s229_s16 = scalar_lea.hbm %s323_s3, 128 }
 0x106   :  { %p230_p7 = scmp.ne.s32.totalorder %s323_s3, %s229_s16  ;;  %p233_p8 = scmp.lt.u32.totalorder %s229_s16, %s323_s3 }
 0x108   :  { %p235_p9 = pnand %p233_p8, %p230_p7 }
 0x10a   :  { %238 = shalt.err (!%p235_p9)
}
 0x10b   :  { %140 = dma.vmem_to_hbm [thread:$0]  %s138_s12, 128, %s323_s3, [#allocation4]  }
 0x10c   :  { %243 = dma.done.wait [#allocation4], 128  }
 0x10d   :  { %244 = vsyncadd [#allocation4], 4294967168 }
 0x10e   :  { %144 = vsyncpa [#allocation3], 1 }
 0x10f   :  { %145 = vsyncpa [#allocation6], 1 }
 0x110   :  { %146 = vsyncpa [#allocation4], 1 }

</bundles_post_ra>
